<compile_context>
chip_gen: v7x
topology: tpu7x:2x2x1
jax: 0.10.0
libtpu: 0.0.40
codegen_flags: <defaults>
</compile_context>

<pallas_src>
import functools

import jax
import jax.numpy as jnp
from jax.experimental import pallas as pl
from jax.experimental.pallas import tpu as pltpu

LANE = 128


def _round_up(x, m):
    return (x + m - 1) // m * m


# ----------------------------------------------------------------------------
# Kernel
# ----------------------------------------------------------------------------
def _critic_kernel(state_ref, action_ref,
                   w1_ref, b1_ref, ln_g_ref, ln_b_ref,
                   w2a_ref, b2a_ref,
                   wo_ref, bo_ref,
                   out_ref, *, l1, l2_pad):
    f32 = jnp.float32
    mxu_dtype = w1_ref.dtype   # f32 or bf16; accumulation is always f32

    # ---- fc1: (TB, NSp) @ (NSp, L1p) + b1 -----------------------------------
    x = jnp.dot(state_ref[...].astype(mxu_dtype), w1_ref[...],
                preferred_element_type=f32) + b1_ref[...]

    # ---- LayerNorm over the TRUE l1 features (padded lanes masked out) ------
    lane = jax.lax.broadcasted_iota(jnp.int32, x.shape, 1)
    real = lane < l1
    inv_n = 1.0 / l1
    xm = jnp.where(real, x, 0.0)
    mean = jnp.sum(xm, axis=-1, keepdims=True) * inv_n
    diff = jnp.where(real, x - mean, 0.0)
    var = jnp.sum(diff * diff, axis=-1, keepdims=True) * inv_n
    x = diff * jax.lax.rsqrt(var + 1e-5) * ln_g_ref[...] + ln_b_ref[...]
    x = jnp.maximum(x, 0.0)                    # padded lanes stay exactly 0

    # ---- fused fc2 / actfc2: one block-diagonal matmul ----------------------
    #   h[:, :l2_pad]  = x      @ w2  (+ b2)
    #   h[:, l2_pad:]  = action @ wa  (+ ba)
    xa = jnp.concatenate(
        [x.astype(mxu_dtype), action_ref[...].astype(mxu_dtype)], axis=-1)
    h = jnp.dot(xa, w2a_ref[...], preferred_element_type=f32) + b2a_ref[...]
    u = jnp.maximum(h[:, :l2_pad], 0.0)        # relu(fc2(x))
    v = h[:, l2_pad:]                          # actfc2(action)
    z = jnp.maximum(u + v, 0.0)

    # ---- output head (N=1): VPU multiply + lane reduce, no MXU pass ---------
    out_ref[...] = jnp.sum(z * wo_ref[...], axis=-1, keepdims=True) + bo_ref[...]


# ----------------------------------------------------------------------------
# Parameter packing: pad to 128 lanes, fuse fc2 + actfc2, transpose output head
# ----------------------------------------------------------------------------
def pack_params(p, n_states, n_action, l1, l2, mxu_dtype=jnp.float32):
    nsp = _round_up(n_states, LANE)
    nap = _round_up(n_action, LANE)
    l1p = _round_up(l1, LANE)
    l2p = _round_up(l2, LANE)

    w1p = jnp.zeros((nsp, l1p), jnp.float32).at[:n_states, :l1].set(p["w1"])
    b1p = jnp.zeros((1, l1p), jnp.float32).at[:, :l1].set(p["b1"])
    gp = jnp.zeros((1, l1p), jnp.float32).at[:, :l1].set(p["ln_g"])
    bp = jnp.zeros((1, l1p), jnp.float32).at[:, :l1].set(p["ln_b"])

    # block-diagonal fused weight:  [ w2  0  ]
    #                               [ 0   wa ]
    w2a = jnp.zeros((l1p + nap, 2 * l2p), jnp.float32)
    w2a = w2a.at[:l1, :l2].set(p["w2"])
    w2a = w2a.at[l1p:l1p + n_action, l2p:l2p + l2].set(p["wa"])
    b2a = jnp.zeros((1, 2 * l2p), jnp.float32)
    b2a = b2a.at[:, :l2].set(p["b2"])
    b2a = b2a.at[:, l2p:l2p + l2].set(p["ba"])

    wop = jnp.zeros((1, l2p), jnp.float32).at[:, :l2].set(p["wo"].reshape(1, -1))
    bo = p["bo"].reshape(1, 1).astype(jnp.float32)

    packed = dict(
        w1=w1p.astype(mxu_dtype), b1=b1p, ln_g=gp, ln_b=bp,
        w2a=w2a.astype(mxu_dtype), b2a=b2a, wo=wop, bo=bo,
    )
    dims = dict(nsp=nsp, nap=nap, l1=l1, l1p=l1p, l2=l2, l2p=l2p)
    return packed, dims


# ----------------------------------------------------------------------------
# Wrapper
# ----------------------------------------------------------------------------
def critic_forward(state, action, packed, dims, *, tile_b=512):
    """state: (B, n_states) f32, action: (B, n_action) f32 -> (B, 1) f32."""
    B = state.shape[0]
    nsp, nap = dims["nsp"], dims["nap"]
    l1p, l2p = dims["l1p"], dims["l2p"]

    tb = min(tile_b, _round_up(B, 8))       # batch tile (rows per grid step)
    b_pad = _round_up(B, tb)

    # one-time layout plumbing: zero-pad batch + feature lanes
    state_p = jnp.zeros((b_pad, nsp), jnp.float32).at[:B, :state.shape[1]].set(state)
    action_p = jnp.zeros((b_pad, nap), jnp.float32).at[:B, :action.shape[1]].set(action)

    kernel = functools.partial(_critic_kernel, l1=dims["l1"], l2_pad=l2p)
    const = lambda i: (0, 0)                # weights: VMEM-resident, no re-DMA

    out = pl.pallas_call(
        kernel,
        out_shape=jax.ShapeDtypeStruct((b_pad, 1), jnp.float32),
        grid=(b_pad // tb,),
        in_specs=[
            pl.BlockSpec((tb, nsp), lambda i: (i, 0)),        # state  (pipelined)
            pl.BlockSpec((tb, nap), lambda i: (i, 0)),        # action (pipelined)
            pl.BlockSpec((nsp, l1p), const),                  # w1
            pl.BlockSpec((1, l1p), const),                    # b1
            pl.BlockSpec((1, l1p), const),                    # ln gamma
            pl.BlockSpec((1, l1p), const),                    # ln beta
            pl.BlockSpec((l1p + nap, 2 * l2p), const),        # fused [w2 | wa]
            pl.BlockSpec((1, 2 * l2p), const),                # fused [b2 | ba]
            pl.BlockSpec((1, l2p), const),                    # output weight row
            pl.BlockSpec((1, 1), const),                      # output bias
        ],
        out_specs=pl.BlockSpec((tb, 1), lambda i: (i, 0)),
        compiler_params=pltpu.CompilerParams(
            dimension_semantics=("parallel",),                # v7x: 2 TCs share batch
            vmem_limit_bytes=32 * 1024 * 1024,
        ),
    )(state_p, action_p,
      packed["w1"], packed["b1"], packed["ln_g"], packed["ln_b"],
      packed["w2a"], packed["b2a"], packed["wo"], packed["bo"])
    return out[:B]


# ----------------------------------------------------------------------------
# Init (mirrors the torch module's parameter shapes; weights stored [in, out])
# ----------------------------------------------------------------------------
def init_params(key, n_states, n_action, layer_1, layer_2):
    ks = jax.random.split(key, 8)
    f1 = 1.0 / jnp.sqrt(jnp.float32(layer_1))
    f2 = 1.0 / jnp.sqrt(jnp.float32(layer_2))

    def u(k, shape, lo, hi):
        return jax.random.uniform(k, shape, jnp.float32, lo, hi)

    return {
        "w1": u(ks[0], (n_states, layer_1), -f1, f1),
        "b1": u(ks[1], (1, layer_1), -f1, f1),
        "ln_g": jnp.ones((1, layer_1), jnp.float32),
        "ln_b": jnp.zeros((1, layer_1), jnp.float32),
        "w2": u(ks[2], (layer_1, layer_2), -f2, f2),
        "b2": u(ks[3], (1, layer_2), -f2, f2),
        "wa": u(ks[4], (n_action, layer_2), -0.1, 0.1),
        "ba": u(ks[5], (1, layer_2), -0.1, 0.1),
        "wo": u(ks[6], (layer_2, 1), -0.1, 0.1),
        "bo": u(ks[7], (1, 1), -0.003, 0.003),
    }


def critic_reference(state, action, p):
    """Plain-JAX reference for correctness checking (unpadded params)."""
    x = state @ p["w1"] + p["b1"]
    mean = jnp.mean(x, axis=-1, keepdims=True)
    var = jnp.mean((x - mean) ** 2, axis=-1, keepdims=True)
    x = (x - mean) / jnp.sqrt(var + 1e-5) * p["ln_g"] + p["ln_b"]
    x = jnp.maximum(x, 0.0)
    x = jnp.maximum(x @ p["w2"] + p["b2"], 0.0)
    a = action @ p["wa"] + p["ba"]
    x = jnp.maximum(x + a, 0.0)
    return x @ p["wo"] + p["bo"]


if __name__ == "__main__":
    # Shapes consistent with the module: n_states=(32,), n_action=8,
    # layer_1=64, layer_2=32.  Kept small so the script runs fast.
    B, N_STATES, N_ACTION, L1, L2 = 8, 32, 8, 64, 32

    key = jax.random.PRNGKey(0)
    k_state, k_action, k_params, k_big = jax.random.split(key, 4)

    state = jax.random.normal(k_state, (B, N_STATES), jnp.float32)
    action = jax.random.normal(k_action, (B, N_ACTION), jnp.float32)
    params = init_params(k_params, N_STATES, N_ACTION, L1, L2)

    packed, dims = pack_params(params, N_STATES, N_ACTION, L1, L2,
                               mxu_dtype=jnp.float32)

    # Single-grid-step run (B=8 -> tb=8).
    out = jax.block_until_ready(critic_forward(state, action, packed, dims))
    ref = critic_reference(state, action, params)
    assert out.shape == (B, 1)
    assert jnp.allclose(out, ref, atol=1e-4, rtol=1e-4), "f32 mismatch vs reference"

    # Multi-step grid with batch padding (B=200 not a multiple of tile_b=64).
    B2 = 200
    kb1, kb2 = jax.random.split(k_big)
    state2 = jax.random.normal(kb1, (B2, N_STATES), jnp.float32)
    action2 = jax.random.normal(kb2, (B2, N_ACTION), jnp.float32)
    out2 = jax.block_until_ready(
        critic_forward(state2, action2, packed, dims, tile_b=64))
    ref2 = critic_reference(state2, action2, params)
    assert out2.shape == (B2, 1)
    assert jnp.allclose(out2, ref2, atol=1e-4, rtol=1e-4), "batched mismatch"

    print("KERNEL_OK")
</pallas_src>

<mosaic_0001>
module attributes {stable_mosaic.version = 11 : i64} {
  func.func @_critic_kernel(%arg0: i32, %arg1: memref<8x128xf32, #tpu.memory_space<vmem>>, %arg2: memref<8x128xf32, #tpu.memory_space<vmem>>, %arg3: memref<128x128xf32, #tpu.memory_space<vmem>>, %arg4: memref<1x128xf32, #tpu.memory_space<vmem>>, %arg5: memref<1x128xf32, #tpu.memory_space<vmem>>, %arg6: memref<1x128xf32, #tpu.memory_space<vmem>>, %arg7: memref<256x256xf32, #tpu.memory_space<vmem>>, %arg8: memref<1x256xf32, #tpu.memory_space<vmem>>, %arg9: memref<1x128xf32, #tpu.memory_space<vmem>>, %arg10: memref<1x1xf32, #tpu.memory_space<vmem>>, %arg11: memref<8x1xf32, #tpu.memory_space<vmem>>) attributes {dimension_semantics = [#tpu.dimension_semantics<parallel>], iteration_bounds = array<i64: 1>, scalar_prefetch = 0 : i64, scratch_operands = 0 : i64, tpu.core_type = #tpu.core_type<tc>, window_params = [{transform_indices = @transform_0, window_bounds = array<i64: 8, 128>}, {transform_indices = @transform_1, window_bounds = array<i64: 8, 128>}, {pipeline_mode = #tpu.pipeline_mode<synchronous>, transform_indices = @transform_2, window_bounds = array<i64: 128, 128>}, {pipeline_mode = #tpu.pipeline_mode<synchronous>, transform_indices = @transform_3, window_bounds = array<i64: 1, 128>}, {pipeline_mode = #tpu.pipeline_mode<synchronous>, transform_indices = @transform_4, window_bounds = array<i64: 1, 128>}, {pipeline_mode = #tpu.pipeline_mode<synchronous>, transform_indices = @transform_5, window_bounds = array<i64: 1, 128>}, {pipeline_mode = #tpu.pipeline_mode<synchronous>, transform_indices = @transform_6, window_bounds = array<i64: 256, 256>}, {pipeline_mode = #tpu.pipeline_mode<synchronous>, transform_indices = @transform_7, window_bounds = array<i64: 1, 256>}, {pipeline_mode = #tpu.pipeline_mode<synchronous>, transform_indices = @transform_8, window_bounds = array<i64: 1, 128>}, {pipeline_mode = #tpu.pipeline_mode<synchronous>, transform_indices = @transform_9, window_bounds = array<i64: 1, 1>}, {transform_indices = @transform_10, window_bounds = array<i64: 8, 1>}]} {
    %c0 = arith.constant 0 : index
    %c0_0 = arith.constant 0 : index
    %0 = vector.load %arg1[%c0, %c0_0] : memref<8x128xf32, #tpu.memory_space<vmem>>, vector<8x128xf32>
    %c0_1 = arith.constant 0 : index
    %c0_2 = arith.constant 0 : index
    %1 = vector.load %arg3[%c0_1, %c0_2] : memref<128x128xf32, #tpu.memory_space<vmem>>, vector<128x128xf32>
    %cst = arith.constant dense<0.000000e+00> : vector<8x128xf32>
    %2 = tpu.matmul %0, %1, %cst {dimension_numbers = #tpu.dot_dimension_numbers<[1], [0], [0], [1], [0, 0, 1, 1], [], []>} : vector<8x128xf32>, vector<128x128xf32>, vector<8x128xf32> -> vector<8x128xf32>
    %c0_3 = arith.constant 0 : index
    %c0_4 = arith.constant 0 : index
    %3 = vector.load %arg4[%c0_3, %c0_4] : memref<1x128xf32, #tpu.memory_space<vmem>>, vector<1x128xf32>
    %4 = vector.broadcast %3 : vector<1x128xf32> to vector<8x128xf32>
    %5 = arith.addf %2, %4 : vector<8x128xf32>
    %6 = tpu.iota {dimensions = array<i32: 1>} : vector<8x128xi32>
    %c64_i32 = arith.constant 64 : i32
    %7 = vector.broadcast %c64_i32 : i32 to vector<8x128xi32>
    %8 = arith.cmpi slt, %6, %7 : vector<8x128xi32>
    %cst_5 = arith.constant 0.000000e+00 : f32
    %9 = vector.broadcast %cst_5 : f32 to vector<8x128xf32>
    %10 = arith.select %8, %5, %9 : vector<8x128xi1>, vector<8x128xf32>
    %cst_6 = arith.constant dense<0.000000e+00> : vector<8xf32>
    %11 = vector.multi_reduction <add>, %10, %cst_6 [1] : vector<8x128xf32> to vector<8xf32>
    %12 = vector.shape_cast %11 : vector<8xf32> to vector<8x1xf32>
    %cst_7 = arith.constant 1.562500e-02 : f32
    %13 = vector.broadcast %cst_7 : f32 to vector<8x1xf32>
    %14 = arith.mulf %12, %13 : vector<8x1xf32>
    %15 = vector.broadcast %14 : vector<8x1xf32> to vector<8x128xf32>
    %16 = arith.subf %5, %15 : vector<8x128xf32>
    %cst_8 = arith.constant 0.000000e+00 : f32
    %17 = vector.broadcast %cst_8 : f32 to vector<8x128xf32>
    %18 = arith.select %8, %16, %17 : vector<8x128xi1>, vector<8x128xf32>
    %19 = arith.mulf %18, %18 : vector<8x128xf32>
    %cst_9 = arith.constant dense<0.000000e+00> : vector<8xf32>
    %20 = vector.multi_reduction <add>, %19, %cst_9 [1] : vector<8x128xf32> to vector<8xf32>
    %21 = vector.shape_cast %20 : vector<8xf32> to vector<8x1xf32>
    %cst_10 = arith.constant 1.562500e-02 : f32
    %22 = vector.broadcast %cst_10 : f32 to vector<8x1xf32>
    %23 = arith.mulf %21, %22 : vector<8x1xf32>
    %cst_11 = arith.constant 9.99999974E-6 : f32
    %24 = vector.broadcast %cst_11 : f32 to vector<8x1xf32>
    %25 = arith.addf %23, %24 : vector<8x1xf32>
    %26 = math.rsqrt %25 : vector<8x1xf32>
    %27 = vector.broadcast %26 : vector<8x1xf32> to vector<8x128xf32>
    %28 = arith.mulf %18, %27 : vector<8x128xf32>
    %c0_12 = arith.constant 0 : index
    %c0_13 = arith.constant 0 : index
    %29 = vector.load %arg5[%c0_12, %c0_13] : memref<1x128xf32, #tpu.memory_space<vmem>>, vector<1x128xf32>
    %30 = vector.broadcast %29 : vector<1x128xf32> to vector<8x128xf32>
    %31 = arith.mulf %28, %30 : vector<8x128xf32>
    %c0_14 = arith.constant 0 : index
    %c0_15 = arith.constant 0 : index
    %32 = vector.load %arg6[%c0_14, %c0_15] : memref<1x128xf32, #tpu.memory_space<vmem>>, vector<1x128xf32>
    %33 = vector.broadcast %32 : vector<1x128xf32> to vector<8x128xf32>
    %34 = arith.addf %31, %33 : vector<8x128xf32>
    %cst_16 = arith.constant 0.000000e+00 : f32
    %35 = vector.broadcast %cst_16 : f32 to vector<8x128xf32>
    %36 = arith.maximumf %34, %35 : vector<8x128xf32>
    %c0_17 = arith.constant 0 : index
    %c0_18 = arith.constant 0 : index
    %37 = vector.load %arg2[%c0_17, %c0_18] : memref<8x128xf32, #tpu.memory_space<vmem>>, vector<8x128xf32>
    %38 = tpu.concatenate %36, %37 in 1 : vector<8x128xf32>, vector<8x128xf32> -> vector<8x256xf32>
    %c0_19 = arith.constant 0 : index
    %c0_20 = arith.constant 0 : index
    %39 = vector.load %arg7[%c0_19, %c0_20] : memref<256x256xf32, #tpu.memory_space<vmem>>, vector<256x256xf32>
    %cst_21 = arith.constant dense<0.000000e+00> : vector<8x256xf32>
    %40 = tpu.matmul %38, %39, %cst_21 {dimension_numbers = #tpu.dot_dimension_numbers<[1], [0], [0], [1], [0, 0, 1, 1], [], []>} : vector<8x256xf32>, vector<256x256xf32>, vector<8x256xf32> -> vector<8x256xf32>
    %c0_22 = arith.constant 0 : index
    %c0_23 = arith.constant 0 : index
    %41 = vector.load %arg8[%c0_22, %c0_23] : memref<1x256xf32, #tpu.memory_space<vmem>>, vector<1x256xf32>
    %42 = vector.broadcast %41 : vector<1x256xf32> to vector<8x256xf32>
    %43 = arith.addf %40, %42 : vector<8x256xf32>
    %44 = vector.extract_strided_slice %43 {offsets = [0, 0], sizes = [8, 128], strides = [1, 1]} : vector<8x256xf32> to vector<8x128xf32>
    %cst_24 = arith.constant 0.000000e+00 : f32
    %45 = vector.broadcast %cst_24 : f32 to vector<8x128xf32>
    %46 = arith.maximumf %44, %45 : vector<8x128xf32>
    %47 = vector.extract_strided_slice %43 {offsets = [0, 128], sizes = [8, 128], strides = [1, 1]} : vector<8x256xf32> to vector<8x128xf32>
    %48 = arith.addf %46, %47 : vector<8x128xf32>
    %cst_25 = arith.constant 0.000000e+00 : f32
    %49 = vector.broadcast %cst_25 : f32 to vector<8x128xf32>
    %50 = arith.maximumf %48, %49 : vector<8x128xf32>
    %c0_26 = arith.constant 0 : index
    %c0_27 = arith.constant 0 : index
    %51 = vector.load %arg9[%c0_26, %c0_27] : memref<1x128xf32, #tpu.memory_space<vmem>>, vector<1x128xf32>
    %52 = vector.broadcast %51 : vector<1x128xf32> to vector<8x128xf32>
    %53 = arith.mulf %50, %52 : vector<8x128xf32>
    %cst_28 = arith.constant dense<0.000000e+00> : vector<8xf32>
    %54 = vector.multi_reduction <add>, %53, %cst_28 [1] : vector<8x128xf32> to vector<8xf32>
    %55 = vector.shape_cast %54 : vector<8xf32> to vector<8x1xf32>
    %c0_29 = arith.constant 0 : index
    %c0_30 = arith.constant 0 : index
    %56 = vector.load %arg10[%c0_29, %c0_30] : memref<1x1xf32, #tpu.memory_space<vmem>>, vector<1x1xf32>
    %57 = vector.broadcast %56 : vector<1x1xf32> to vector<8x1xf32>
    %58 = arith.addf %55, %57 : vector<8x1xf32>
    %c0_31 = arith.constant 0 : index
    %c0_32 = arith.constant 0 : index
    %59 = vector.load %arg11[%c0_31, %c0_32] : memref<8x1xf32, #tpu.memory_space<vmem>>, vector<8x1xf32>
    tpu.vector_store %arg11[%c0_31, %c0_32], %58 {strides = array<i32>} : memref<8x1xf32, #tpu.memory_space<vmem>>, vector<8x1xf32>,
    return
  }
  func.func @transform_0(%arg0: i32) -> (i32, i32) {
    %c0_i32 = arith.constant 0 : i32
    %c0_i32_0 = arith.constant 0 : i32
    return %arg0, %c0_i32 : i32, i32
  }
  func.func @transform_1(%arg0: i32) -> (i32, i32) {
    %c0_i32 = arith.constant 0 : i32
    %c0_i32_0 = arith.constant 0 : i32
    return %arg0, %c0_i32 : i32, i32
  }
  func.func @transform_2(%arg0: i32) -> (i32, i32) {
    %c0_i32 = arith.constant 0 : i32
    %c0_i32_0 = arith.constant 0 : i32
    %c0_i32_1 = arith.constant 0 : i32
    return %c0_i32, %c0_i32_0 : i32, i32
  }
  func.func @transform_3(%arg0: i32) -> (i32, i32) {
    %c0_i32 = arith.constant 0 : i32
    %c0_i32_0 = arith.constant 0 : i32
    %c0_i32_1 = arith.constant 0 : i32
    return %c0_i32, %c0_i32_0 : i32, i32
  }
  func.func @transform_4(%arg0: i32) -> (i32, i32) {
    %c0_i32 = arith.constant 0 : i32
    %c0_i32_0 = arith.constant 0 : i32
    %c0_i32_1 = arith.constant 0 : i32
    return %c0_i32, %c0_i32_0 : i32, i32
  }
  func.func @transform_5(%arg0: i32) -> (i32, i32) {
    %c0_i32 = arith.constant 0 : i32
    %c0_i32_0 = arith.constant 0 : i32
    %c0_i32_1 = arith.constant 0 : i32
    return %c0_i32, %c0_i32_0 : i32, i32
  }
  func.func @transform_6(%arg0: i32) -> (i32, i32) {
    %c0_i32 = arith.constant 0 : i32
    %c0_i32_0 = arith.constant 0 : i32
    %c0_i32_1 = arith.constant 0 : i32
    return %c0_i32, %c0_i32_0 : i32, i32
  }
  func.func @transform_7(%arg0: i32) -> (i32, i32) {
    %c0_i32 = arith.constant 0 : i32
    %c0_i32_0 = arith.constant 0 : i32
    %c0_i32_1 = arith.constant 0 : i32
    return %c0_i32, %c0_i32_0 : i32, i32
  }
  func.func @transform_8(%arg0: i32) -> (i32, i32) {
    %c0_i32 = arith.constant 0 : i32
    %c0_i32_0 = arith.constant 0 : i32
    %c0_i32_1 = arith.constant 0 : i32
    return %c0_i32, %c0_i32_0 : i32, i32
  }
  func.func @transform_9(%arg0: i32) -> (i32, i32) {
    %c0_i32 = arith.constant 0 : i32
    %c0_i32_0 = arith.constant 0 : i32
    %c0_i32_1 = arith.constant 0 : i32
    return %c0_i32, %c0_i32_0 : i32, i32
  }
  func.func @transform_10(%arg0: i32) -> (i32, i32) {
    %c0_i32 = arith.constant 0 : i32
    %c0_i32_0 = arith.constant 0 : i32
    return %arg0, %c0_i32 : i32, i32
  }
}

</mosaic_0001>

<bundles_post_ra>
// kernel: tpu_custom_call.1
= control target key start
LH: loop header
LB: loop body
LE: loop exit
PB: predicated region body
PF: predicated region fallthrough
CT: control target
= control target key end

     0   :  { %s793_s0 = inlined_call_operand.hbm [shape: f32[8,128], index: 0, kind: input, shape index: {}]   ;;  %s794_s1 = inlined_call_operand.hbm [shape: f32[8,128], index: 1, kind: input, shape index: {}]   ;;  %s795_s2 = inlined_call_operand.hbm [shape: f32[128,128], index: 2, kind: input, shape index: {}]   ;;  %s796_s3 = inlined_call_operand.vmem [shape: f32[1,128], index: 3, kind: input, shape index: {}]   ;;  %s797_s4 = inlined_call_operand.vmem [shape: f32[1,128], index: 4, kind: input, shape index: {}]   ;;  %s798_s5 = inlined_call_operand.vmem [shape: f32[1,128], index: 5, kind: input, shape index: {}]   ;;  %s799_s6 = inlined_call_operand.hbm [shape: f32[256,256], index: 6, kind: input, shape index: {}]   ;;  %s800_s7 = inlined_call_operand.vmem [shape: f32[1,256], index: 7, kind: input, shape index: {}]   ;;  %s801_s8 = inlined_call_operand.vmem [shape: f32[1,128], index: 8, kind: input, shape index: {}]   ;;  %s802_s9 = inlined_call_operand.<no memory space> [shape: f32[1,1], index: 9, kind: input, shape index: {}]   ;;  %s803_s10 = inlined_call_operand.vmem [shape: f32[8,1], index: 10, kind: output, shape index: {}]  }
   0x1   :  { %v15_v0 = vstv %s802_s9 }
   0x2   :  { %16 = vst [vmem:[#allocation2] sm:$0x1] %v15_v0 }
   0x3   :  { %17 = vsyncpa [#allocation4], 0 }
   0x4   :  { %18 = vsyncpa [#allocation6], 0 }
   0x5   :  { %19 = vsyncpa [#allocation9], 0  ;;  %s645_s15 = smov [#allocation5]   ;;  %s646_s17 = smov [#allocation3]  }
   0x6   :  { %s36_s16 = sshll.u32 %s645_s15, 4  ;;  %s26_s18 = sshll.u32 %s646_s17, 4  ;;  %s37_s16 = int_to_ptr.vmem [resolvable:$true] %s36_s16  ;;  %s27_s18 = int_to_ptr.vmem [resolvable:$true] %s26_s18 }
   0x7   :  { %s551_s21 = scalar_lea.hbm %s794_s1, 128 }
   0x8   :  { %p552_p0 = scmp.ne.s32.totalorder %s794_s1, %s551_s21  ;;  %p555_p1 = scmp.lt.u32.totalorder %s551_s21, %s794_s1 }
   0xa   :  { %p557_p2 = pnand %p555_p1, %p552_p0 }
   0xc   :  { %560 = shalt.err (!%p557_p2)
}
   0xd   :  { %s561_s25 = scalar_lea.vmem %s37_s16, 128  ;;  %p566_p4 = scmp.lt.s32.totalorder %s37_s16, %s37_s16 }
   0xe   :  { %p562_p3 = scmp.ne.s32.totalorder %s37_s16, %s561_s25  ;;  %p567_p5 = scmp.lt.s32.totalorder %s561_s25, %s561_s25 }
  0x10   :  { %p568_p6 = por %p567_p5, %p566_p4 }
  0x12   :  { %p569_p7 = pnand %p568_p6, %p562_p3 }
  0x14   :  { %572 = shalt.err (!%p569_p7)
}
  0x15   :  { %39 = dma.hbm_to_vmem [thread:$0]  %s794_s1, 128, %s37_s16, [#allocation6]  }
  0x16   :  { %s573_s30 = scalar_lea.hbm %s793_s0, 128 }
  0x17   :  { %p574_p8 = scmp.ne.s32.totalorder %s793_s0, %s573_s30  ;;  %p577_p9 = scmp.lt.u32.totalorder %s573_s30, %s793_s0 }
  0x19   :  { %p579_p10 = pnand %p577_p9, %p574_p8 }
  0x1b   :  { %582 = shalt.err (!%p579_p10)
}
  0x1c   :  { %s583_s15 = scalar_lea.vmem %s27_s18, 128  ;;  %p588_p12 = scmp.lt.s32.totalorder %s27_s18, %s27_s18 }
  0x1d   :  { %p584_p11 = scmp.ne.s32.totalorder %s27_s18, %s583_s15  ;;  %p589_p13 = scmp.lt.s32.totalorder %s583_s15, %s583_s15 }
  0x1f   :  { %p590_p0 = por %p589_p13, %p588_p12 }
  0x21   :  { %p591_p1 = pnand %p590_p0, %p584_p11 }
  0x23   :  { %594 = shalt.err (!%p591_p1)
}
  0x24   :  { %29 = dma.hbm_to_vmem [thread:$0]  %s793_s0, 128, %s27_s18, [#allocation4]  }
  0x25   :  { %s647_s17 = smov [#allocation7]   ;;  %s595_s22 = scalar_lea.hbm %s795_s2, 2048 }
  0x26   :  { %s45_s19 = sshll.u32 %s647_s17, 4  ;;  %p596_p2 = scmp.ne.s32.totalorder %s795_s2, %s595_s22  ;;  %s46_s19 = int_to_ptr.vmem [resolvable:$true] %s45_s19 }
  0x27   :  { %p599_p3 = scmp.lt.u32.totalorder %s595_s22, %s795_s2 }
  0x29   :  { %p601_p4 = pnand %p599_p3, %p596_p2 }
  0x2b   :  { %604 = shalt.err (!%p601_p4)
}
  0x2c   :  { %s605_s26 = scalar_lea.vmem %s46_s19, 2048  ;;  %p610_p6 = scmp.lt.s32.totalorder %s46_s19, %s46_s19 }
  0x2d   :  { %p606_p5 = scmp.ne.s32.totalorder %s46_s19, %s605_s26  ;;  %p611_p7 = scmp.lt.s32.totalorder %s605_s26, %s605_s26 }
  0x2f   :  { %p612_p8 = por %p611_p7, %p610_p6 }
  0x31   :  { %p613_p9 = pnand %p612_p8, %p606_p5 }
  0x33   :  { %616 = shalt.err (!%p613_p9)
}
  0x34   :  { %s648_s0 = smov 128   ;;  %s649_s18 = smov 8  }
  0x35   :  { %51 = dma.hbm_to_vmem [thread:$0]  %s795_s2, 2048, %s46_s19, [#allocation6], %s648_s0, %s648_s0, %s649_s18  }
  0x36   :  { %s650_s29 = smov [#allocation8]   ;;  %s617_s13 = scalar_lea.hbm %s799_s6, 8192 }
  0x37   :  { %s63_s30 = sshll.u32 %s650_s29, 4  ;;  %p618_p10 = scmp.ne.s32.totalorder %s799_s6, %s617_s13  ;;  %s64_s30 = int_to_ptr.vmem [resolvable:$true] %s63_s30 }
  0x38   :  { %p621_p11 = scmp.lt.u32.totalorder %s617_s13, %s799_s6 }
  0x3a   :  { %p623_p12 = pnand %p621_p11, %p618_p10 }
  0x3c   :  { %626 = shalt.err (!%p623_p12)
}
  0x3d   :  { %s627_s17 = scalar_lea.vmem %s64_s30, 8192  ;;  %p632_p0 = scmp.lt.s32.totalorder %s64_s30, %s64_s30 }
  0x3e   :  { %p628_p13 = scmp.ne.s32.totalorder %s64_s30, %s627_s17  ;;  %p633_p1 = scmp.lt.s32.totalorder %s627_s17, %s627_s17 }
  0x40   :  { %p634_p2 = por %p633_p1, %p632_p0 }
  0x42   :  { %p635_p3 = pnand %p634_p2, %p628_p13 }
  0x44   :  { %638 = shalt.err (!%p635_p3)
}
  0x45   :  { %s651_s2 = smov 256   ;;  %s652_s19 = smov 16  }
  0x46   :  { %69 = dma.hbm_to_vmem [thread:$0]  %s799_s6, 8192, %s64_s30, [#allocation9], %s651_s2, %s651_s2, %s652_s19  }
  0x47   :  { %639 = dma.done.wait [#allocation4], 128  }
  0x48   :  { %640 = vsyncadd [#allocation4], 4294967168 }
  0x49   :  { %641 = dma.done.wait [#allocation6], 2176  }
  0x4a   :  { %642 = vsyncadd [#allocation6], 4294965120 }
  0x4b   :  { %643 = dma.done.wait [#allocation9], 8192  }
  0x4c   :  { %644 = vsyncadd [#allocation9], 4294959104  ;;  %v653_v1 = vmov 0.0|0.0   ;;  %vm654_vm0 = vmmov 0   ;;  %v655_v2 = vmov 0.0   ;;  %v89_v3 = vld [vmem:[#allocation7] sm:$0xff]  ;;  %v182_v28 = vlaneseq }
  0x4d   :  { %450 = vmatprep.subr.bf16.mxu0 %v653_v1  ;;  %447 = vmatprep.mubr.msk.f32.mxu0 %vm654_vm0, %v655_v2  ;;  %v90_v4 = vld [vmem:[#allocation7 + $0x8] sm:$0xff]  ;;  %v91_v5 = vld [vmem:[#allocation7 + $0x10] sm:$0xff]  ;;  %v92_v7 = vld [vmem:[#allocation7 + $0x18] sm:$0xff]  ;;  %vm384_vm2 = vcmask 7168  }
  0x4e   :  { %v451_v6 = vpack.c.bf16 %v90_v4, %v89_v3  ;;  %v454_v8 = vpack.c.bf16 %v92_v7, %v91_v5  ;;  %v93_v9 = vld [vmem:[#allocation7 + $0x20] sm:$0xff]  ;;  %v94_v10 = vld [vmem:[#allocation7 + $0x28] sm:$0xff]  ;;  %v95_v12 = vld [vmem:[#allocation7 + $0x30] sm:$0xff]  ;;  %v763_v29 = vand.u32 127, %v182_v28 }
  0x4f   :  { %v457_v11 = vpack.c.bf16 %v94_v10, %v93_v9  ;;  %v96_v13 = vld [vmem:[#allocation7 + $0x38] sm:$0xff]  ;;  %v97_v15 = vld [vmem:[#allocation7 + $0x40] sm:$0xff]  ;;  %v98_v16 = vld [vmem:[#allocation7 + $0x48] sm:$0xff] }
  0x50   :  { %452 = vmatpush3.bf16.msra.mxu0 %v451_v6  ;;  %v460_v14 = vpack.c.bf16 %v96_v13, %v95_v12  ;;  %v463_v17 = vpack.c.bf16 %v98_v16, %v97_v15  ;;  %v99_v18 = vld [vmem:[#allocation7 + $0x50] sm:$0xff]  ;;  %v100_v19 = vld [vmem:[#allocation7 + $0x58] sm:$0xff]  ;;  %v101_v21 = vld [vmem:[#allocation7 + $0x60] sm:$0xff]  ;;  %vm184_vm1 = vcmp.lt.s32.totalorder %v763_v29, 64 }
  0x51   :  { %453 = vmatprep.subr.bf16.mxu0 %v653_v1  ;;  %v466_v20 = vpack.c.bf16 %v100_v19, %v99_v18  ;;  %v102_v22 = vld [vmem:[#allocation7 + $0x68] sm:$0xff]  ;;  %v103_v24 = vld [vmem:[#allocation7 + $0x70] sm:$0xff]  ;;  %v104_v25 = vld [vmem:[#allocation7 + $0x78] sm:$0xff] }
  0x52   :  { %v469_v23 = vpack.c.bf16 %v102_v22, %v101_v21  ;;  %v472_v26 = vpack.c.bf16 %v104_v25, %v103_v24  ;;  %v88_v27 = vld [vmem:[#allocation3] sm:$0xff]  ;;  %v393_v30 = vld [vmem:[%s796_s3] ss:$0 sm:$0xff]  ;;  %v219_v36 = vld [vmem:[#allocation8 + $0x18] sm:$0xff] }
  0x53   :  { %v217_v35 = vld [vmem:[#allocation8 + $0x8] sm:$0xff]  ;;  %v216_v37 = vld [vmem:[#allocation8] sm:$0xff]  ;;  %v218_v39 = vld [vmem:[#allocation8 + $0x10] sm:$0xff] }
  0x54   :  { %455 = vmatpush3.bf16.msra.mxu0 %v454_v8  ;;  %v474_v38 = vpack.c.bf16 %v219_v36, %v217_v35  ;;  %v221_v40 = vld [vmem:[#allocation8 + $0x28] sm:$0xff]  ;;  %v223_v41 = vld [vmem:[#allocation8 + $0x38] sm:$0xff]  ;;  %v476_v42 = vpack.c.bf16 %v218_v39, %v216_v37  ;;  %v220_v44 = vld [vmem:[#allocation8 + $0x20] sm:$0xff] }
  0x55   :  { %456 = vmatprep.subr.bf16.mxu0 %v653_v1  ;;  %v478_v43 = vpack.c.bf16 %v223_v41, %v221_v40  ;;  %v222_v45 = vld [vmem:[#allocation8 + $0x30] sm:$0xff]  ;;  %v225_v46 = vld [vmem:[#allocation8 + $0x48] sm:$0xff]  ;;  %v227_v47 = vld [vmem:[#allocation8 + $0x58] sm:$0xff] }
  0x56   :  { %475 = vmatprep.subr.bf16.mxu1 %v474_v38  ;;  %v480_v48 = vpack.c.bf16 %v222_v45, %v220_v44  ;;  %v482_v49 = vpack.c.bf16 %v227_v47, %v225_v46  ;;  %v224_v50 = vld [vmem:[#allocation8 + $0x40] sm:$0xff]  ;;  %v226_v51 = vld [vmem:[#allocation8 + $0x50] sm:$0xff]  ;;  %v229_v52 = vld [vmem:[#allocation8 + $0x68] sm:$0xff] }
  0x57   :  { %477 = vmatpush1.bf16.msra.mxu1 %v476_v42  ;;  %v231_v53 = vld [vmem:[#allocation8 + $0x78] sm:$0xff]  ;;  %v484_v54 = vpack.c.bf16 %v226_v51, %v224_v50  ;;  %v228_v56 = vld [vmem:[#allocation8 + $0x60] sm:$0xff]  ;;  %v230_v57 = vld [vmem:[#allocation8 + $0x70] sm:$0xff] }
  0x58   :  { %458 = vmatpush3.bf16.msra.mxu0 %v457_v11  ;;  %479 = vmatprep.subr.bf16.mxu1 %v478_v43  ;;  %v486_v55 = vpack.c.bf16 %v231_v53, %v229_v52  ;;  %v233_v58 = vld [vmem:[#allocation8 + $0x88] sm:$0xff]  ;;  %v235_v59 = vld [vmem:[#allocation8 + $0x98] sm:$0xff]  ;;  %v488_v60 = vpack.c.bf16 %v230_v57, %v228_v56  ;;  %v232_v62 = vld [vmem:[#allocation8 + $0x80] sm:$0xff] }
  0x59   :  { %459 = vmatprep.subr.bf16.mxu0 %v653_v1  ;;  %v490_v61 = vpack.c.bf16 %v235_v59, %v233_v58  ;;  %v234_v63 = vld [vmem:[#allocation8 + $0x90] sm:$0xff]  ;;  %v237_v0 = vld [vmem:[#allocation8 + $0xa8] sm:$0xff]  ;;  %v236_v4 = vld [vmem:[#allocation8 + $0xa0] sm:$0xff] }
  0x5a   :  { %v492_v2 = vpack.c.bf16 %v234_v63, %v232_v62  ;;  %v238_v5 = vld [vmem:[#allocation8 + $0xb0] sm:$0xff]  ;;  %v241_v6 = vld [vmem:[#allocation8 + $0xc8] sm:$0xff]  ;;  %v243_v7 = vld [vmem:[#allocation8 + $0xd8] sm:$0xff] }
  0x5b   :  { %481 = vmatpush1.bf16.msra.mxu1 %v480_v48  ;;  %v496_v8 = vpack.c.bf16 %v238_v5, %v236_v4  ;;  %v498_v9 = vpack.c.bf16 %v243_v7, %v241_v6  ;;  %v240_v10 = vld [vmem:[#allocation8 + $0xc0] sm:$0xff]  ;;  %v242_v11 = vld [vmem:[#allocation8 + $0xd0] sm:$0xff]  ;;  %v245_v12 = vld [vmem:[#allocation8 + $0xe8] sm:$0xff] }
  0x5c   :  { %461 = vmatpush3.bf16.msra.mxu0 %v460_v14  ;;  %483 = vmatprep.subr.bf16.mxu1 %v482_v49  ;;  %v247_v13 = vld [vmem:[#allocation8 + $0xf8] sm:$0xff]  ;;  %v500_v14 = vpack.c.bf16 %v242_v11, %v240_v10  ;;  %v244_v16 = vld [vmem:[#allocation8 + $0xe0] sm:$0xff]  ;;  %v249_v18 = vld [vmem:[#allocation8 + $0x108] sm:$0xff] }
  0x5d   :  { %462 = vmatprep.subr.bf16.mxu0 %v653_v1  ;;  %v502_v15 = vpack.c.bf16 %v247_v13, %v245_v12  ;;  %v251_v19 = vld [vmem:[#allocation8 + $0x118] sm:$0xff]  ;;  %v248_v22 = vld [vmem:[#allocation8 + $0x100] sm:$0xff]  ;;  %v253_v24 = vld [vmem:[#allocation8 + $0x128] sm:$0xff] }
  0x5e   :  { %v506_v21 = vpack.c.bf16 %v251_v19, %v249_v18  ;;  %v255_v25 = vld [vmem:[#allocation8 + $0x138] sm:$0xff]  ;;  %v256_v42 = vld [vmem:[#allocation8 + $0x140] sm:$0xff]  ;;  %v258_v43 = vld [vmem:[#allocation8 + $0x150] sm:$0xff] }
  0x5f   :  { %485 = vmatpush1.bf16.msra.mxu1 %v484_v54  ;;  %v516_v44 = vpack.c.bf16 %v258_v43, %v256_v42  ;;  %v261_v45 = vld [vmem:[#allocation8 + $0x168] sm:$0xff]  ;;  %v263_v46 = vld [vmem:[#allocation8 + $0x178] sm:$0xff]  ;;  %v260_v48 = vld [vmem:[#allocation8 + $0x160] sm:$0xff] }
  0x60   :  { %464 = vmatpush3.bf16.msra.mxu0 %v463_v17  ;;  %487 = vmatprep.subr.bf16.mxu1 %v486_v55  ;;  %v246_v17 = vld [vmem:[#allocation8 + $0xf0] sm:$0xff]  ;;  %v518_v47 = vpack.c.bf16 %v263_v46, %v261_v45  ;;  %v265_v51 = vld [vmem:[#allocation8 + $0x188] sm:$0xff]  ;;  %v267_v52 = vld [vmem:[#allocation8 + $0x198] sm:$0xff] }
  0x61   :  { %465 = vmatprep.subr.bf16.mxu0 %v653_v1  ;;  %v262_v49 = vld [vmem:[#allocation8 + $0x170] sm:$0xff]  ;;  %v522_v53 = vpack.c.bf16 %v267_v52, %v265_v51  ;;  %v269_v54 = vld [vmem:[#allocation8 + $0x1a8] sm:$0xff]  ;;  %v271_v55 = vld [vmem:[#allocation8 + $0x1b8] sm:$0xff] }
  0x62   :  { %v520_v50 = vpack.c.bf16 %v262_v49, %v260_v48  ;;  %v266_v29 = vld [vmem:[#allocation8 + $0x190] sm:$0xff]  ;;  %v526_v57 = vpack.c.bf16 %v271_v55, %v269_v54  ;;  %v268_v58 = vld [vmem:[#allocation8 + $0x1a0] sm:$0xff]  ;;  %v279_v4 = vld [vmem:[#allocation8 + $0x1f8] sm:$0xff] }
  0x63   :  { %489 = vmatpush1.bf16.msra.mxu1 %v488_v60  ;;  %v270_v59 = vld [vmem:[#allocation8 + $0x1b0] sm:$0xff]  ;;  %v273_v60 = vld [vmem:[#allocation8 + $0x1c8] sm:$0xff]  ;;  %v276_v7 = vld [vmem:[#allocation8 + $0x1e0] sm:$0xff] }
  0x64   :  { %467 = vmatpush3.bf16.msra.mxu0 %v466_v20  ;;  %491 = vmatprep.subr.bf16.mxu1 %v490_v61  ;;  %v504_v20 = vpack.c.bf16 %v246_v17, %v244_v16  ;;  %v275_v61 = vld [vmem:[#allocation8 + $0x1d8] sm:$0xff]  ;;  %v528_v62 = vpack.c.bf16 %v270_v59, %v268_v58  ;;  %v395_v16 = vld [vmem:[%s798_s5] ss:$0 sm:$0xff] }
  0x65   :  { %468 = vmatprep.subr.bf16.mxu0 %v653_v1  ;;  %v530_v63 = vpack.c.bf16 %v275_v61, %v273_v60 }
  0x67   :  { %493 = vmatpush1.bf16.msra.mxu1 %v492_v2  ;;  %v215_v2 = vld [vmem:[#allocation5] sm:$0xff] }
  0x68   :  { %470 = vmatpush3.bf16.msra.mxu0 %v469_v23  ;;  %v250_v23 = vld [vmem:[#allocation8 + $0x110] sm:$0xff]  ;;  %356 = vmatprep.mubr.f32.mxu1 %v215_v2 }
  0x69   :  { %471 = vmatprep.subr.bf16.mxu0 %v653_v1  ;;  %v239_v1 = vld [vmem:[#allocation8 + $0xb8] sm:$0xff] }
  0x6a   :  { %v494_v3 = vpack.c.bf16 %v239_v1, %v237_v0  ;;  %v272_v0 = vld [vmem:[#allocation8 + $0x1c0] sm:$0xff]  ;;  %v274_v1 = vld [vmem:[#allocation8 + $0x1d0] sm:$0xff] }
  0x6b   :  { %v532_v5 = vpack.c.bf16 %v274_v1, %v272_v0 }
  0x6c   :  { %473 = vmatpush3.bf16.msra.mxu0 %v472_v26  ;;  %495 = vmatprep.subr.bf16.mxu1 %v494_v3  ;;  %v508_v26 = vpack.c.bf16 %v250_v23, %v248_v22  ;;  %v277_v3 = vld [vmem:[#allocation8 + $0x1e8] sm:$0xff] }
  0x6d   :  { %497 = vmatpush1.bf16.msra.mxu1 %v496_v8  ;;  %v534_v6 = vpack.c.bf16 %v279_v4, %v277_v3  ;;  %v278_v8 = vld [vmem:[#allocation8 + $0x1f0] sm:$0xff] }
  0x6e   :  { %499 = vmatprep.subr.bf16.mxu1 %v498_v9  ;;  %v536_v9 = vpack.c.bf16 %v278_v8, %v276_v7  ;;  %v280_v22 = vld [vmem:[%s800_s7] sm:$0x3] }
  0x6f   :  { %448 = vmatmul.mubr.f32.vlgmr.msra.gmra.mrb[0].mxu0 %v88_v27  ;;  %v510_v27 = vpack.c.bf16 %v255_v25, %v253_v24 }
  0x71   :  { %501 = vmatpush1.bf16.msra.mxu1 %v500_v14  ;;  %v394_v14 = vld [vmem:[%s797_s4] ss:$0 sm:$0xff] }
  0x72   :  { %503 = vmatprep.subr.bf16.mxu1 %v502_v15 }
  0x75   :  { %505 = vmatpush1.bf16.msra.mxu1 %v504_v20  ;;  %v283_v20 = vshrl.u32 %v182_v28, 7 }
  0x76   :  { %507 = vmatprep.subr.bf16.mxu1 %v506_v21 }
  0x77   :  { %v284_v21 = vsub.s32 0, %v283_v20  ;;  %v288_v23 = vsub.s32 1, %v283_v20 }
  0x79   :  { %509 = vmatpush1.bf16.msra.mxu1 %v508_v26  ;;  %v285_v24 = vrot.slane %v280_v22, %v284_v21  ;;  %v289_v25 = vrot.slane %v280_v22, %v288_v23 }
  0x7a   :  { %511 = vmatprep.subr.bf16.mxu1 %v510_v27 }
 0x142   :  { %v178_v31 = vpop.f32.mrb[0].mxu0 }
 0x143   :  { %v769_v32 = vadd.f32 %v393_v30, %v178_v31  ;;  %v449_v33 = vpop.f32.mrb[1].mxu0  ;;  %v252_v30 = vld [vmem:[#allocation8 + $0x120] sm:$0xff]  ;;  %v254_v31 = vld [vmem:[#allocation8 + $0x130] sm:$0xff] }
 0x144   :  { %v257_v33 = vld [vmem:[#allocation8 + $0x148] sm:$0xff]  ;;  %v512_v35 = vpack.c.bf16 %v254_v31, %v252_v30 }
 0x145   :  { %v185_v34 = vsel %vm184_vm1, %v769_v32, 0.0 }
 0x146   :  { %186 = vadd.xlane.f32.xlu0 %v185_v34  ;;  %v259_v34 = vld [vmem:[#allocation8 + $0x158] sm:$0xff]  ;;  %513 = vmatpush1.bf16.msra.mxu1 %v512_v35  ;;  %v396_v35 = vld [vmem:[%s801_s8] ss:$0 sm:$0xff] }
 0x147   :  { %v514_v36 = vpack.c.bf16 %v259_v34, %v257_v33 }
 0x149   :  { %515 = vmatprep.subr.bf16.mxu1 %v514_v36 }
 0x14a   :  { %517 = vmatpush1.bf16.msra.mxu1 %v516_v44 }
 0x14b   :  { %519 = vmatprep.subr.bf16.mxu1 %v518_v47 }
 0x14e   :  { %521 = vmatpush1.bf16.msra.mxu1 %v520_v50 }
 0x14f   :  { %523 = vmatprep.subr.bf16.mxu1 %v522_v53 }
 0x1d3   :  { %v187_v37 = vpop.xlane.xlu0 %186 }
 0x1d4   :  { %v188_v38 = vmul.f32 0.015625, %v187_v37  ;;  %v397_v37 = vld [vmem:[#allocation2] ss:$0 sm:$0xff] }
 0x1d6   :  { %v189_v39 = vsub.f32 %v769_v32, %v188_v38  ;;  %v264_v32 = vld [vmem:[#allocation8 + $0x180] sm:$0xff] }
 0x1d7   :  { %v524_v56 = vpack.c.bf16 %v266_v29, %v264_v32 }
 0x1d8   :  { %v190_v40 = vsel %vm184_vm1, %v189_v39, 0.0 }
 0x1d9   :  { %v191_v41 = vmul.f32 %v190_v40, %v190_v40  ;;  %525 = vmatpush1.bf16.msra.mxu1 %v524_v56 }
 0x1da   :  { %527 = vmatprep.subr.bf16.mxu1 %v526_v57 }
 0x1db   :  { %192 = vadd.xlane.f32.xlu0 %v191_v41 }
 0x1dd   :  { %529 = vmatpush1.bf16.msra.mxu1 %v528_v62 }
 0x1de   :  { %531 = vmatprep.subr.bf16.mxu1 %v530_v63 }
 0x1e1   :  { %533 = vmatpush1.bf16.msra.mxu1 %v532_v5 }
 0x1e2   :  { %535 = vmatprep.subr.bf16.mxu1 %v534_v6 }
 0x1e5   :  { %537 = vmatpush1.bf16.msra.mxu1 %v536_v9 }
 0x268   :  { %v193_v10 = vpop.xlane.xlu0 %192 }
 0x269   :  { %v194_v11 = vmul.f32 0.015625, %v193_v10 }
 0x26b   :  { %v195_v12 = vadd.f32 1e-05, %v194_v11 }
 0x26d   :  { %549 = vrsqrt.f32 %v195_v12 }
 0x277   :  { %v550_v13 = vpop.eup %549 }
 0x278   :  { %v197_v15 = vmul.f32 %v550_v13, %v190_v40 }
 0x27a   :  { %v205_v17 = vmul.f32 %v394_v14, %v197_v15 }
 0x27c   :  { %v213_v18 = vadd.f32 %v395_v16, %v205_v17 }
 0x27e   :  { %v214_v19 = vmax.f32 %v213_v18, 0.0 }
 0x280   :  { %357 = vmatmul.mubr.f32.vlgmr.msra.gmra.mrb[0].mxu1 %v214_v19 }
 0x353   :  { %v358_v26 = vpop.f32.mrb[0].mxu1 }
 0x354   :  { %v359_v27 = vadd.f32 %v358_v26, %v285_v24  ;;  %v360_v30 = vpop.f32.mrb[1].mxu1 }
 0x355   :  { %v361_v31 = vadd.f32 %v360_v30, %v289_v25 }
 0x356   :  { %v363_v33 = vmax.f32 %v359_v27, 0.0 }
 0x358   :  { %v364_v34 = vadd.f32 %v363_v33, %v361_v31 }
 0x35a   :  { %v365_v36 = vmax.f32 %v364_v34, 0.0 }
 0x35c   :  { %v373_v28 = vmul.f32 %v396_v35, %v365_v36 }
 0x35e   :  { %374 = vadd.xlane.f32.xlu1 %v373_v28 }
 0x3eb   :  { %v375_v38 = vpop.xlane.xlu1 %374 }
 0x3ec   :  { %v383_v39 = vadd.f32 %v397_v37, %v375_v38 }
 0x3ee   :  { %385 = vst.msk [vmem:[%s803_s10] sm:$0xff] %vm384_vm2, %v383_v39 }
 0x3ef   :  { %390 = vsyncpa [#allocation4], 1 }
 0x3f0   :  { %391 = vsyncpa [#allocation6], 1 }
 0x3f1   :  { %392 = vsyncpa [#allocation9], 1 }

</bundles_post_ra>
